<compile_context>
chip_gen: v7x
topology: tpu7x:2x2x1
jax: 0.10.0
libtpu: 0.0.40
codegen_flags: <defaults>
</compile_context>

<pallas_src>
import functools

import jax
import jax.numpy as jnp
import numpy as np
from jax.experimental import pallas as pl
from jax.experimental.pallas import tpu as pltpu


# ----------------------------- host-side weight builders ----------------------------- #

def _bilinear_matrix(out_size: int, in_size: int) -> np.ndarray:
    """Row-interpolation matrix for align_corners=True bilinear resize: (out, in)."""
    w = np.zeros((out_size, in_size), dtype=np.float32)
    if out_size == 1 or in_size == 1:
        w[:, 0] = 1.0
        return w
    src = np.arange(out_size, dtype=np.float64) * (in_size - 1) / (out_size - 1)
    lo = np.clip(np.floor(src).astype(np.int64), 0, in_size - 2)
    frac = (src - lo).astype(np.float32)
    rows = np.arange(out_size)
    w[rows, lo] += 1.0 - frac
    w[rows, lo + 1] += frac
    return w


def _nearest_matrix(out_size: int, in_size: int) -> np.ndarray:
    """One-hot nearest-neighbor selection matrix (align_corners mapping): (out, in)."""
    w = np.zeros((out_size, in_size), dtype=np.float32)
    if out_size == 1 or in_size == 1:
        w[:, 0] = 1.0
        return w
    src = np.arange(out_size, dtype=np.float64) * (in_size - 1) / (out_size - 1)
    idx = np.clip(np.floor(src + 0.5).astype(np.int64), 0, in_size - 1)
    w[np.arange(out_size), idx] = 1.0
    return w


@functools.lru_cache(maxsize=None)
def _resize_weights(H, W, Ho, Wo, compute_dtype_name):
    """Device-resident resize operators (kernel inputs, not baked constants)."""
    wy = jnp.asarray(_bilinear_matrix(Ho, H)).astype(compute_dtype_name)      # (Ho, H)
    wxt = jnp.asarray(_bilinear_matrix(Wo, W).T).astype(compute_dtype_name)   # (W, Wo)
    # bf16 one-hot selectors are exactly lossless for integer labels <= 256.
    sy = jnp.asarray(_nearest_matrix(Ho, H)).astype(jnp.bfloat16)             # (Ho, H)
    sxt = jnp.asarray(_nearest_matrix(Wo, W).T).astype(jnp.bfloat16)          # (W, Wo)
    return wy, wxt, sy, sxt


# --------------------------------- kernels ------------------------------------------- #

def _image_resize_kernel(scale_ref,   # (C,)   f32 SMEM: 1/std per channel
                         shift_ref,   # (C,)   f32 SMEM: -mean/std per channel
                         x_ref,       # (H, W) one channel (channel dim squeezed)
                         wy_ref,      # (Ho, H) bilinear row weights (compute dtype)
                         wxt_ref,     # (W, Wo) bilinear col weights^T (compute dtype)
                         out_ref):    # (Ho, Wo) f32
    c = pl.program_id(0)
    # Normalize BEFORE resize (matches the torch module order and stays exact even
    # when the bilinear weights are bf16).
    xn = x_ref[...].astype(jnp.float32) * scale_ref[c] + shift_ref[c]          # (H, W)
    t = jnp.dot(wy_ref[...], xn.astype(wy_ref.dtype),
                preferred_element_type=jnp.float32)                           # (Ho, W)
    out_ref[...] = jnp.dot(t.astype(wxt_ref.dtype), wxt_ref[...],
                           preferred_element_type=jnp.float32
                           ).astype(out_ref.dtype)                            # (Ho, Wo)


def _mask_resize_kernel(m_ref,        # (H, W) mask (native dtype)
                        sy_ref,       # (Ho, H) bf16 one-hot row selector
                        sxt_ref,      # (W, Wo) bf16 one-hot col selector^T
                        out_ref):     # (Ho, Wo) f32
    m = m_ref[...].astype(jnp.float32).astype(sy_ref.dtype)
    t = jnp.dot(sy_ref[...], m, preferred_element_type=jnp.float32)           # (Ho, W)
    out_ref[...] = jnp.dot(t.astype(sxt_ref.dtype), sxt_ref[...],
                           preferred_element_type=jnp.float32)                # (Ho, Wo)


# --------------------------------- wrapper ------------------------------------------- #

@jax.jit
def _seg_resize_impl(image, mask, scale, shift, wy, wxt, sy, sxt):
    C, H, W = image.shape
    Ho = wy.shape[0]
    Wo = wxt.shape[1]

    cost = pl.CostEstimate(
        flops=2 * C * (Ho * H * W + Ho * W * Wo) + 2 * C * H * W,
        transcendentals=0,
        bytes_accessed=(image.size * image.dtype.itemsize
                        + wy.size * wy.dtype.itemsize
                        + wxt.size * wxt.dtype.itemsize
                        + C * Ho * Wo * 4),
    )

    smem = pl.BlockSpec(memory_space=pltpu.MemorySpace.SMEM)
    # NOTE: output last dim = Wo; for very small `size` this means partially masked
    # stores — negligible here and avoids an extra wrapper slice/transpose pass.
    img_out = pl.pallas_call(
        _image_resize_kernel,
        out_shape=jax.ShapeDtypeStruct((C, Ho, Wo), jnp.float32),
        grid=(C,),
        in_specs=[
            smem,                                                   # scale (C,)
            smem,                                                   # shift (C,)
            pl.BlockSpec((None, H, W), lambda c: (c, 0, 0)),        # one channel / step
            pl.BlockSpec((Ho, H), lambda c: (0, 0)),                # shared, stays resident
            pl.BlockSpec((W, Wo), lambda c: (0, 0)),                # shared, stays resident
        ],
        out_specs=pl.BlockSpec((None, Ho, Wo), lambda c: (c, 0, 0)),
        compiler_params=pltpu.CompilerParams(
            dimension_semantics=("parallel",)),                     # v7x: 2 TCs split channels
        cost_estimate=cost,
    )(scale, shift, image, wy, wxt)

    vmem = pl.BlockSpec(memory_space=pltpu.MemorySpace.VMEM)
    mask_out = pl.pallas_call(
        _mask_resize_kernel,
        out_shape=jax.ShapeDtypeStruct((Ho, Wo), jnp.float32),
        in_specs=[vmem, vmem, vmem],
        out_specs=vmem,
    )(mask, sy, sxt)

    return img_out, mask_out


def seg_data_augmentation(batch, band_stats, size, split="val",
                          compute_dtype=jnp.bfloat16):
    """Mirrors SegDataAugmentation.forward (deterministic Resize path)."""
    image, mask = batch["image"], batch["mask"]
    C, H, W = image.shape
    Ho, Wo = (size, size) if isinstance(size, int) else tuple(size)

    if band_stats is not None:
        mean = np.asarray(band_stats["mean"], np.float32)
        std = np.asarray(band_stats["std"], np.float32)
    else:
        mean = np.zeros((1,), np.float32)
        std = np.ones((1,), np.float32)
    mean = np.broadcast_to(mean, (C,)).astype(np.float32)
    std = np.broadcast_to(std, (C,)).astype(np.float32)
    scale = jnp.asarray(1.0 / std)           # (C,)
    shift = jnp.asarray(-mean / std)         # (C,)

    # TODO(synk): split == 'train' stochastic augs not implemented (deterministic path only).
    wy, wxt, sy, sxt = _resize_weights(H, W, Ho, Wo, np.dtype(compute_dtype).name)
    x_out, mask_out = _seg_resize_impl(image, mask, scale, shift, wy, wxt, sy, sxt)
    # mask returned as float (matching the kornia pipeline output dtype).
    return x_out, mask_out, batch["meta"]


# --------------------------------- main ---------------------------------------------- #

if __name__ == "__main__":
    key = jax.random.PRNGKey(0)
    C, H, W = 4, 16, 16
    size = 8

    k_img, k_msk = jax.random.split(key)
    image = jax.random.normal(k_img, (C, H, W), dtype=jnp.float32) * 3.0 + 1.0
    mask = jax.random.randint(k_msk, (H, W), 0, 3, dtype=jnp.int32)

    band_stats = {"mean": [0.5, -0.25, 1.0, 0.0], "std": [2.0, 0.5, 1.5, 1.0]}
    batch = {"image": image, "mask": mask, "meta": {"id": 0}}

    # Pure-JAX reference (normalize -> align_corners bilinear / nearest resize).
    mean = jnp.asarray(band_stats["mean"], jnp.float32).reshape(C, 1, 1)
    std = jnp.asarray(band_stats["std"], jnp.float32).reshape(C, 1, 1)
    xn = (image - mean) / std
    wy_ref_m = jnp.asarray(_bilinear_matrix(size, H))
    wx_ref_m = jnp.asarray(_bilinear_matrix(size, W))
    ref_img = jnp.einsum("oh,chw,pw->cop", wy_ref_m, xn, wx_ref_m,
                         precision=jax.lax.Precision.HIGHEST)
    sy_ref_m = jnp.asarray(_nearest_matrix(size, H))
    sx_ref_m = jnp.asarray(_nearest_matrix(size, W))
    ref_mask = sy_ref_m @ mask.astype(jnp.float32) @ sx_ref_m.T

    # ---- exact-parity run (f32 operands) ----
    x32, m32, meta = seg_data_augmentation(batch, band_stats, size, split="val",
                                           compute_dtype=jnp.float32)
    jax.block_until_ready((x32, m32))
    assert x32.shape == (C, size, size) and m32.shape == (size, size)
    assert jnp.allclose(x32, ref_img, atol=1e-4, rtol=1e-4)
    assert jnp.allclose(m32, ref_mask, atol=1e-6)

    # ---- default run: bf16 matmul operands (MXU-native on v6e/v7x), f32 accumulation ----
    xbf, mbf, _ = seg_data_augmentation(batch, band_stats, size, split="val")
    jax.block_until_ready((xbf, mbf))
    tol = 2e-2 * float(jnp.max(jnp.abs(ref_img)))
    assert jnp.allclose(xbf, ref_img, atol=tol, rtol=2e-2)
    assert jnp.allclose(mbf, ref_mask, atol=1e-6)  # one-hot bf16 mask path is lossless

    print("KERNEL_OK")
</pallas_src>

<mosaic_0001>
module attributes {stable_mosaic.version = 11 : i64} {
  func.func @_image_resize_kernel(%arg0: i32, %arg1: memref<4xf32, #tpu.memory_space<smem>>, %arg2: memref<4xf32, #tpu.memory_space<smem>>, %arg3: memref<1x16x16xf32, #tpu.memory_space<vmem>>, %arg4: memref<8x16xf32, #tpu.memory_space<vmem>>, %arg5: memref<16x8xf32, #tpu.memory_space<vmem>>, %arg6: memref<1x8x8xf32, #tpu.memory_space<vmem>>) attributes {dimension_semantics = [#tpu.dimension_semantics<parallel>], iteration_bounds = array<i64: 4>, scalar_prefetch = 0 : i64, scratch_operands = 0 : i64, tpu.core_type = #tpu.core_type<tc>, window_params = [{transform_indices = @transform_0, window_bounds = array<i64: 4>}, {transform_indices = @transform_1, window_bounds = array<i64: 4>}, {transform_indices = @transform_2, window_bounds = array<i64: 1, 16, 16>}, {pipeline_mode = #tpu.pipeline_mode<synchronous>, transform_indices = @transform_3, window_bounds = array<i64: 8, 16>}, {pipeline_mode = #tpu.pipeline_mode<synchronous>, transform_indices = @transform_4, window_bounds = array<i64: 16, 8>}, {transform_indices = @transform_5, window_bounds = array<i64: 1, 8, 8>}]} {
    %c0 = arith.constant 0 : index
    %c0_0 = arith.constant 0 : index
    %c0_1 = arith.constant 0 : index
    %0 = vector.load %arg3[%c0, %c0_0, %c0_1] : memref<1x16x16xf32, #tpu.memory_space<vmem>>, vector<1x16x16xf32>
    %1 = vector.shape_cast %0 : vector<1x16x16xf32> to vector<16x16xf32>
    %2 = arith.index_cast %arg0 : i32 to index
    %3 = memref.load %arg1[%2] : memref<4xf32, #tpu.memory_space<smem>>
    %4 = vector.broadcast %3 : f32 to vector<16x16xf32>
    %5 = arith.mulf %1, %4 : vector<16x16xf32>
    %6 = arith.index_cast %arg0 : i32 to index
    %7 = memref.load %arg2[%6] : memref<4xf32, #tpu.memory_space<smem>>
    %8 = vector.broadcast %7 : f32 to vector<16x16xf32>
    %9 = arith.addf %5, %8 : vector<16x16xf32>
    %c0_2 = arith.constant 0 : index
    %c0_3 = arith.constant 0 : index
    %10 = vector.load %arg4[%c0_2, %c0_3] : memref<8x16xf32, #tpu.memory_space<vmem>>, vector<8x16xf32>
    %cst = arith.constant dense<0.000000e+00> : vector<8x16xf32>
    %11 = tpu.matmul %10, %9, %cst {dimension_numbers = #tpu.dot_dimension_numbers<[1], [0], [0], [1], [0, 0, 1, 1], [], []>} : vector<8x16xf32>, vector<16x16xf32>, vector<8x16xf32> -> vector<8x16xf32>
    %c0_4 = arith.constant 0 : index
    %c0_5 = arith.constant 0 : index
    %12 = vector.load %arg5[%c0_4, %c0_5] : memref<16x8xf32, #tpu.memory_space<vmem>>, vector<16x8xf32>
    %cst_6 = arith.constant dense<0.000000e+00> : vector<8x8xf32>
    %13 = tpu.matmul %11, %12, %cst_6 {dimension_numbers = #tpu.dot_dimension_numbers<[1], [0], [0], [1], [0, 0, 1, 1], [], []>} : vector<8x16xf32>, vector<16x8xf32>, vector<8x8xf32> -> vector<8x8xf32>
    %c0_7 = arith.constant 0 : index
    %c0_8 = arith.constant 0 : index
    %c0_9 = arith.constant 0 : index
    %14 = vector.load %arg6[%c0_7, %c0_8, %c0_9] : memref<1x8x8xf32, #tpu.memory_space<vmem>>, vector<1x8x8xf32>
    %15 = vector.shape_cast %14 : vector<1x8x8xf32> to vector<8x8xf32>
    %16 = vector.shape_cast %13 : vector<8x8xf32> to vector<1x8x8xf32>
    tpu.vector_store %arg6[%c0_7, %c0_8, %c0_9], %16 {strides = array<i32>} : memref<1x8x8xf32, #tpu.memory_space<vmem>>, vector<1x8x8xf32>,
    return
  }
  func.func @transform_0(%arg0: i32) -> i32 {
    %c0_i32 = arith.constant 0 : i32
    %c0_i32_0 = arith.constant 0 : i32
    return %c0_i32 : i32
  }
  func.func @transform_1(%arg0: i32) -> i32 {
    %c0_i32 = arith.constant 0 : i32
    %c0_i32_0 = arith.constant 0 : i32
    return %c0_i32 : i32
  }
  func.func @transform_2(%arg0: i32) -> (i32, i32, i32) {
    %c0_i32 = arith.constant 0 : i32
    %c0_i32_0 = arith.constant 0 : i32
    %c0_i32_1 = arith.constant 0 : i32
    return %arg0, %c0_i32, %c0_i32_0 : i32, i32, i32
  }
  func.func @transform_3(%arg0: i32) -> (i32, i32) {
    %c0_i32 = arith.constant 0 : i32
    %c0_i32_0 = arith.constant 0 : i32
    %c0_i32_1 = arith.constant 0 : i32
    return %c0_i32, %c0_i32_0 : i32, i32
  }
  func.func @transform_4(%arg0: i32) -> (i32, i32) {
    %c0_i32 = arith.constant 0 : i32
    %c0_i32_0 = arith.constant 0 : i32
    %c0_i32_1 = arith.constant 0 : i32
    return %c0_i32, %c0_i32_0 : i32, i32
  }
  func.func @transform_5(%arg0: i32) -> (i32, i32, i32) {
    %c0_i32 = arith.constant 0 : i32
    %c0_i32_0 = arith.constant 0 : i32
    %c0_i32_1 = arith.constant 0 : i32
    return %arg0, %c0_i32, %c0_i32_0 : i32, i32, i32
  }
}

module attributes {stable_mosaic.version = 11 : i64} {
  func.func @_mask_resize_kernel(%arg0: memref<16x16xi32, #tpu.memory_space<vmem>>, %arg1: memref<8x16xbf16, #tpu.memory_space<vmem>>, %arg2: memref<16x8xbf16, #tpu.memory_space<vmem>>, %arg3: memref<8x8xf32, #tpu.memory_space<vmem>>) attributes {dimension_semantics = [], scalar_prefetch = 0 : i64, scratch_operands = 0 : i64, tpu.core_type = #tpu.core_type<tc>} {
    %c0 = arith.constant 0 : index
    %c0_0 = arith.constant 0 : index
    %0 = vector.load %arg0[%c0, %c0_0] : memref<16x16xi32, #tpu.memory_space<vmem>>, vector<16x16xi32>
    %1 = arith.sitofp %0 : vector<16x16xi32> to vector<16x16xf32>
    %2 = arith.truncf %1 : vector<16x16xf32> to vector<16x16xbf16>
    %c0_1 = arith.constant 0 : index
    %c0_2 = arith.constant 0 : index
    %3 = vector.load %arg1[%c0_1, %c0_2] : memref<8x16xbf16, #tpu.memory_space<vmem>>, vector<8x16xbf16>
    %cst = arith.constant dense<0.000000e+00> : vector<8x16xf32>
    %4 = tpu.matmul %3, %2, %cst {dimension_numbers = #tpu.dot_dimension_numbers<[1], [0], [0], [1], [0, 0, 1, 1], [], []>} : vector<8x16xbf16>, vector<16x16xbf16>, vector<8x16xf32> -> vector<8x16xf32>
    %5 = arith.truncf %4 : vector<8x16xf32> to vector<8x16xbf16>
    %c0_3 = arith.constant 0 : index
    %c0_4 = arith.constant 0 : index
    %6 = vector.load %arg2[%c0_3, %c0_4] : memref<16x8xbf16, #tpu.memory_space<vmem>>, vector<16x8xbf16>
    %cst_5 = arith.constant dense<0.000000e+00> : vector<8x8xf32>
    %7 = tpu.matmul %5, %6, %cst_5 {dimension_numbers = #tpu.dot_dimension_numbers<[1], [0], [0], [1], [0, 0, 1, 1], [], []>} : vector<8x16xbf16>, vector<16x8xbf16>, vector<8x8xf32> -> vector<8x8xf32>
    %c0_6 = arith.constant 0 : index
    %c0_7 = arith.constant 0 : index
    %8 = vector.load %arg3[%c0_6, %c0_7] : memref<8x8xf32, #tpu.memory_space<vmem>>, vector<8x8xf32>
    tpu.vector_store %arg3[%c0_6, %c0_7], %7 {strides = array<i32>} : memref<8x8xf32, #tpu.memory_space<vmem>>, vector<8x8xf32>,
    return
  }
}

</mosaic_0001>

<bundles_post_ra>
// kernel: _seg_resize_impl.3
= control target key start
LH: loop header
LB: loop body
LE: loop exit
PB: predicated region body
PF: predicated region fallthrough
CT: control target
= control target key end

     0   :  { %v181_v2 = vmov 0.0   ;;  %vm182_vm0 = vmmov 0   ;;  %s228_s0 = inlined_call_operand.vmem [shape: s32[16,16], index: 0, kind: input, shape index: {}]   ;;  %s229_s1 = inlined_call_operand.vmem [shape: bf16[8,16], index: 1, kind: input, shape index: {}]   ;;  %s230_s2 = inlined_call_operand.vmem [shape: bf16[16,8], index: 2, kind: input, shape index: {}]   ;;  %s231_s3 = inlined_call_operand.hbm [shape: f32[8,8], index: 3, kind: output, shape index: {}]  }
   0x1   :  { %v16_v0 = vld [vmem:[%s228_s0] sm:$0xff]  ;;  %v17_v1 = vld [vmem:[%s228_s0 + $0x8] sm:$0xff]  ;;  %141 = vmatprep.subr.bf16.mxu0 %v181_v2  ;;  %143 = vmatprep.mubr.msk.bf16.mxu0 %vm182_vm0, %v181_v2 }
   0x2   :  { %v18_v3 = vcvt.s32.f32 %v16_v0  ;;  %v19_v4 = vcvt.s32.f32 %v17_v1  ;;  %147 = vmatprep.subr.bf16.mxu1 %v181_v2  ;;  %149 = vmatprep.mubr.msk.bf16.mxu1 %vm182_vm0, %v181_v2 }
   0x3   :  { %8 = vsyncpa [#allocation3], 0  ;;  %v21_v6 = vld [vmem:[%s229_s1] sm:$0xf]  ;;  %vm22_vm1 = vcmask 130048   ;;  %s183_s0 = smov [#allocation2]  }
   0x4   :  { %v20_v5 = vpack.c.bf16 %v19_v4, %v18_v3  ;;  %v156_v7 = vld [vmem:[%s230_s2] sm:$0xff]   ;;  %s126_s20 = sshll.u32 %s183_s0, 4  ;;  %vm118_vm2 = vcmask 64512   ;;  %s127_s20 = int_to_ptr.vmem [resolvable:$true] %s126_s20 }
   0x5   :  { %148 = vmatpush3.bf16.msra.mxu1 %v156_v7  ;;  %s157_s1 = scalar_lea.vmem %s127_s20, 128  ;;  %p162_p1 = scmp.lt.s32.totalorder %s127_s20, %s127_s20 }
   0x6   :  { %142 = vmatpush3.bf16.msra.mxu0 %v20_v5  ;;  %p158_p0 = scmp.ne.s32.totalorder %s127_s20, %s157_s1  ;;  %p163_p2 = scmp.lt.s32.totalorder %s157_s1, %s157_s1 }
   0x8   :  { %p164_p3 = por %p163_p2, %p162_p1 }
   0x9   :  { %144 = vmatmul.mubr.msk.bf16.vlgmr.msra.gmra.mrb[0].mxu0 %vm22_vm1, %v21_v6 }
   0xa   :  { %p165_p4 = pnand %p164_p3, %p158_p0 }
  0xdc   :  { %v60_v8 = vpop.f32.mrb[0].mxu0 }
  0xdd   :  { %v66_v9 = vpack.c.bf16 %v60_v8, %v60_v8  ;;  %v145_v10 = vpop.f32.mrb[1].mxu0 }
  0xde   :  { %v63_v11 = vpop.f32.mrb[2].mxu0 }
  0xdf   :  { %v146_v12 = vpop.f32.mrb[3].mxu0  ;;  %150 = vmatmul.mubr.msk.bf16.vlgmr.msra.gmra.mrb[0].mxu1 %vm22_vm1, %v66_v9 }
 0x1b2   :  { %v112_v13 = vpop.f32.mrb[0].mxu1 }
 0x1b3   :  { %119 = vst.msk [vmem:[#allocation2] sm:$0xff] %vm118_vm2, %v112_v13  ;;  %v151_v14 = vpop.f32.mrb[1].mxu1 }
 0x1b4   :  { %v115_v15 = vpop.f32.mrb[2].mxu1 }
 0x1b5   :  { %168 = shalt.err (!%p165_p4)
}
 0x1b6   :  { %s169_s22 = scalar_lea.hbm %s231_s3, 128 }
 0x1b7   :  { %p170_p5 = scmp.ne.s32.totalorder %s231_s3, %s169_s22  ;;  %p173_p6 = scmp.lt.u32.totalorder %s169_s22, %s231_s3 }
 0x1b9   :  { %p175_p7 = pnand %p173_p6, %p170_p5 }
 0x1bb   :  { %178 = shalt.err (!%p175_p7)
}
 0x1bc   :  { %129 = dma.vmem_to_hbm [thread:$0]  %s127_s20, 128, %s231_s3, [#allocation3]   ;;  %v152_v16 = vpop.f32.mrb[3].mxu1 }
 0x1bd   :  { %179 = dma.done.wait [#allocation3], 128  }
 0x1be   :  { %180 = vsyncadd [#allocation3], 4294967168 }
 0x1bf   :  { %133 = vsyncpa [#allocation3], 1 }

// kernel: _seg_resize_impl.2
= control target key start
LH: loop header
LB: loop body
LE: loop exit
PB: predicated region body
PF: predicated region fallthrough
CT: control target
= control target key end

     0   :  { %10 = vsyncpa [#allocation5], 0  ;;  %s1043_s0 = inlined_call_operand.vmem [shape: f32[4], index: 0, kind: input, shape index: {}]   ;;  %s1044_s1 = inlined_call_operand.vmem [shape: f32[4], index: 1, kind: input, shape index: {}]   ;;  %s1045_s2 = inlined_call_operand.hbm [shape: f32[4,16,16], index: 2, kind: input, shape index: {}]   ;;  %s1046_s3 = inlined_call_operand.vmem [shape: f32[8,16], index: 3, kind: input, shape index: {}]   ;;  %s1047_s4 = inlined_call_operand.vmem [shape: f32[16,8], index: 4, kind: input, shape index: {}]   ;;  %s1048_s5 = inlined_call_operand.hbm [shape: f32[4,8,8], index: 5, kind: output, shape index: {}]  }
   0x1   :  { %11 = vsyncpa [#allocation7], 0 }
   0x2   :  { %12 = vsyncpa [#allocation3], 0 }
   0x3   :  { %14 = vsyncpa [#allocation3 + $0x1], 0 }
   0x4   :  { %15 = vsyncpa [#allocation4], 0 }
   0x5   :  { %17 = vsyncpa [#allocation4 + $0x1], 0  ;;  %s831_s18 = smov 0   ;;  %s833_s19 = smov 0  }
   0x6   :  { %s835_s20 = smov 0   ;;  %s837_s21 = smov 0  }
   0x7 LB: > { %s852_s22 = sadd.s32 4294967295, %s790_s21   ;;  %s538_s23 = sadd.s32 4294967294, %s790_s21   ;;  %s790_s21 = sphi %s837_s21, %s1073_s21   ;;  %s786_s20 = sphi %s835_s20, %s1072_s20   ;;  %s782_s19 = sphi %s833_s19, %s1071_s19   ;;  %s778_s18 = sphi %s831_s18, %s1070_s18  }
   0x8   : > { %s856_s24 = sadd.s32 1, %s790_s21   ;;  %s72_s25 = sadd.s32 1, %s786_s20 }
   0x9   : > { %s69_s26 = ssub.s32 %s790_s21, %s856_s24  ;;  %p79_p0 = scmp.ne.s32.totalorder %s786_s20, %s782_s19 }
   0xa   : > { %p70_p1 = scmp.eq.s32.totalorder %s69_s26, 0  ;;  %p80_p2 = scmp.eq.s32.totalorder %s790_s21, 0 }
   0xb   : > { %p85_p3 = scmp.ne.s32.totalorder %s782_s19, %s778_s18  ;;  %p1049_p4 = scmp.eq.s32.totalorder %s852_s22, 0 }
   0xc   : > { %s868_s27 = scalar_select %p70_p1, %s786_s20, %s72_s25  }
   0xd   : > { %p870_p5 = por %p80_p2, %p79_p0  ;;  %p876_p6 = por %p1049_p4, %p85_p3 }
   0xe   : > { %p151_p7 = scmp.eq.s32.totalorder %s852_s22, 3  ;;  %p157_p8 = scmp.eq.s32.totalorder %s538_s23, 3 }
   0xf   : > { %s1055_s29 = scalar_select %p876_p6, 1, 0 }
  0x10   : > { %p539_p9 = scmp.ge.s32.totalorder %s790_s21, 1  ;;  %p164_p10 = scmp.lt.s32.totalorder %s790_s21, 5 }
  0x11   : > { %p883_p11 = por %p151_p7, %p79_p0  ;;  %p887_p12 = por %p157_p8, %p85_p3 }
  0x12   : > { %p891_p13 = pnand %p539_p9, %p164_p10  ;;  %s177_s10 = sshll.u32 %s1043_s0, 4  ;;  %s178_s10 = int_to_ptr.vmem [resolvable:$true] %s177_s10 }
  0x13   : > { %s1056_s30 = scalar_select %p883_p11, 1, 0 }
  0x14   : > { %s1057_s6 = scalar_select %p887_p12, 1, 0 }
  0x15   : > { %s1058_s7 = scalar_select %p891_p13, 1, 0 }
  0x16   : > { %p596_p1 = pneg %p891_p13  ;;  %p613_p0 = scmp.lt.s32.totalorder %s790_s21, 4 }
  0x17   : > { %s188_s14 = sshll.u32 %s1044_s1, 4  ;;  %s656_s16 = scalar_lea.vmem %s178_s10, 16  ;;  %s189_s14 = int_to_ptr.vmem [resolvable:$true] %s188_s14 }
  0x18   : > { %p903_p2 = pnand %p596_p1, %p1049_p4  ;;  %p912_p3 = pnand %p613_p0, %p870_p5 }
  0x19   : > { %p657_p7 = scmp.ne.s32.totalorder %s178_s10, %s656_s16  ;;  %p664_p1 = scmp.lt.s32.totalorder %s178_s10, %s178_s10 }
  0x1a   : > { %s1060_s15 = scalar_select %p912_p3, 1, 0 }
  0x1b   : > { %p658_p8 = pneg %p903_p2  ;;  %p665_p4 = scmp.lt.s32.totalorder %s656_s16, %s656_s16 }
  0x1d   : > { %p659_p9 = pnand %p658_p8, %p657_p7  ;;  %p666_p12 = por %p665_p4, %p664_p1 }
  0x1f   : > { %p660_p10 = pneg %p659_p9 }
  0x21   : > { %p667_p11 = pnand %p666_p12, %p660_p10 }
  0x23   : > { %670 = shalt.err (!%p667_p11)
}
  0x24   : > { %s792_s17 = smov [#allocation2]   ;;  %s205_s23 = sand.u32 1, %s786_s20  }
  0x25   : > { %599 = dma.vmem_to_smem (!%p903_p2), %s178_s10, 16, %s792_s17, [#allocation5]  }
  0x26   : > { %s671_s25 = scalar_lea.vmem %s189_s14, 16  ;;  %p679_p7 = scmp.lt.s32.totalorder %s189_s14, %s189_s14 }
  0x27   : > { %p672_p5 = scmp.ne.s32.totalorder %s189_s14, %s671_s25  ;;  %p680_p9 = scmp.lt.s32.totalorder %s671_s25, %s671_s25 }
  0x29   : > { %p674_p0 = pnand %p672_p5, %p658_p8  ;;  %p681_p13 = por %p680_p9, %p679_p7 }
  0x2b   : > { %p675_p6 = pneg %p674_p0 }
  0x2d   : > { %p682_p3 = pnand %p681_p13, %p675_p6 }
  0x2f   : > { %685 = shalt.err (!%p682_p3)
}
  0x30   : > { %s793_s26 = smov [#allocation6]   ;;  %s543_s28 = sshll.u32 %s205_s23, 4 }
  0x31   : > { %602 = dma.vmem_to_smem (!%p903_p2), %s189_s14, 16, %s793_s26, [#allocation7]  }
  0x32   : > { %s557_s8 = sshll.u32 %s790_s21, 8  ;;  %s209_s13 = scalar_lea.vmem [#allocation8], %s543_s28 }
  0x33   : > { %s933_s12 = scalar_lea.hbm %s1045_s2, %s557_s8  ;;  %s216_s16 = sshll.u32 %s209_s13, 4  ;;  %s935_s16 = int_to_ptr.vmem [resolvable:$true] %s216_s16 }
  0x34   : > { %s937_s11 = scalar_lea.sflag [#allocation3], %s205_s23  ;;  %s686_s17 = scalar_lea.hbm %s933_s12, 256 }
  0x35   : > { %p687_p4 = scmp.ne.s32.totalorder %s933_s12, %s686_s17  ;;  %p1061_p6 = scmp.ne.s32.totalorder %s1060_s15, 0 }
  0x36   : > { %s691_s26 = scalar_lea.hbm %s1045_s2, 1024  ;;  %p692_p2 = scmp.lt.u32.totalorder %s933_s12, %s1045_s2 }
  0x37   : > { %p688_p11 = pneg %p1061_p6  ;;  %p693_p3 = scmp.lt.u32.totalorder %s691_s26, %s686_s17 }
  0x38   : > { %p695_p10 = scmp.lt.u32.totalorder %s686_s17, %s933_s12 }
  0x39   : > { %p689_p12 = pnand %p688_p11, %p687_p4  ;;  %p694_p8 = por %p693_p3, %p692_p2 }
  0x3b   : > { %p690_p13 = pneg %p689_p12  ;;  %p696_p1 = por %p695_p10, %p694_p8 }
  0x3d   : > { %p697_p5 = pnand %p696_p1, %p690_p13 }
  0x3f   : > { %700 = shalt.err (!%p697_p5)
}
  0x40   : > { %s701_s23 = scalar_lea.vmem %s935_s16, 256  ;;  %s794_s28 = smov [#allocation8]  }
  0x41   : > { %p702_p0 = scmp.ne.s32.totalorder %s935_s16, %s701_s23  ;;  %s706_s10 = sshll.u32 %s794_s28, 4  ;;  %s707_s10 = int_to_ptr.vmem [resolvable:$false] %s706_s10 }
  0x42   : > { %s708_s13 = scalar_lea.vmem %s707_s10, 512  ;;  %p709_p4 = scmp.lt.s32.totalorder %s935_s16, %s707_s10 }
  0x43   : > { %p704_p7 = pnand %p702_p0, %p688_p11  ;;  %p710_p12 = scmp.lt.s32.totalorder %s708_s13, %s701_s23 }
  0x45   : > { %p705_p9 = pneg %p704_p7  ;;  %p711_p2 = por %p710_p12, %p709_p4 }
  0x47   : > { %p712_p3 = pnand %p711_p2, %p705_p9 }
  0x49   : > { %715 = shalt.err (!%p712_p3)
}
  0x4a   : > { %s795_s17 = smov 128   ;;  %s796_s14 = smov 8  }
  0x4b   : > { %606 = dma.hbm_to_vmem [thread:$0]  (!%p1061_p6), %s933_s12, 256, %s935_s16, %s937_s11, %s795_s17, %s795_s17, %s796_s14  }
  0x4c   : > { %p1062_p11 = scmp.ne.s32.totalorder %s1058_s7, 0 }
  0x4d   : > { %p1063_p13 = scmp.eq.s32.totalorder (!%p1062_p11), %s852_s22, 0 }
  0x4e   : > { %228 = sbr.rel (%p1062_p11) target bundleno = 550 (0x226), region = 40 }
  0x55   : > { %761 = dma.done.wait (%p1063_p13), [#allocation5], 16   ;;  %p1064_p8 = pmov %p1063_p13 }
  0x57   : > { %763 = vsyncadd (%p1064_p8), [#allocation5], 4294967280  ;;  %p1065_p10 = pmov %p1064_p8 }
  0x58   : > { %p1066_p1 = pmov %p1064_p8 }
  0x59   : > { %765 = dma.done.wait (%p1065_p10), [#allocation7], 16  }
  0x5a   : > { %767 = vsyncadd (%p1066_p1), [#allocation7], 4294967280  ;;  %s976_s25 = sand.u32 1, %s782_s19   ;;  %p1067_p6 = scmp.ne.s32.totalorder %s1055_s29, 0 }
  0x5b   : > { %s549_s7 = sshll.u32 %s976_s25, 4  ;;  %s239_s15 = scalar_lea.sflag [#allocation3], %s976_s25 }
  0x5c   : > { %s242_s12 = scalar_lea.vmem [#allocation8], %s549_s7 }
  0x5d   : > { %769 = dma.done.wait (%p1067_p6), %s239_s15, 256  }
  0x5e   : > { %771 = vsyncadd (%p1067_p6), %s239_s15, 4294967040 }
  0x5f   : > { %247 = sfence }
  0x60   : > { %s272_s16 = sld [smem:[#allocation2 + %s852_s22]]  ;;  %v797_v0 = vmov 0.0|0.0   ;;  %v355_v1 = vld [vmem:[%s1047_s4] sm:$0xff]  ;;  %v356_v2 = vld [vmem:[%s1047_s4 + $0x8] sm:$0xff]  ;;  %vm798_vm0 = vmmov 0   ;;  %v799_v3 = vmov 0.0  }
  0x61   : > { %s276_s11 = sld [smem:[#allocation6 + %s852_s22]]  ;;  %578 = vmatprep.subr.bf16.mxu0 %v797_v0  ;;  %581 = vmatprep.subr.bf16.mxu1 %v797_v0  ;;  %v582_v4 = vpack.c.bf16 %v356_v2, %v355_v1  ;;  %v270_v5 = vld [vmem:[%s242_s12] sm:$0xff]  ;;  %v271_v6 = vld [vmem:[%s242_s12 + $0x8] sm:$0xff]  ;;  %vm281_vm1 = vcmask 130048   ;;  %s550_s10 = sshll.u32 %s976_s25, 3  ;;  %vm430_vm2 = vcmask 64512  }
  0x62   : > { %568 = vmatprep.mubr.msk.f32.mxu0 %vm798_vm0, %v799_v3  ;;  %575 = vmatprep.mubr.msk.f32.mxu1 %vm798_vm0, %v799_v3  ;;  %v280_v14 = vld [vmem:[%s1046_s3] sm:$0xff]  ;;  %s554_s13 = sshll.u32 %s852_s22, 7  ;;  %s269_s17 = scalar_lea.vmem [#allocation9], %s550_s10 }
  0x63   : > { %583 = vmatpush3.bf16.msra.mxu1 %v582_v4  ;;  %s446_s14 = sshll.u32 %s269_s17, 4  ;;  %s1000_s12 = scalar_lea.hbm %s1048_s5, %s554_s13  ;;  %s1002_s14 = int_to_ptr.vmem [resolvable:$true] %s446_s14 }
  0x64   : > { %p1068_p0 = scmp.ne.s32.totalorder %s1056_s30, 0  ;;  %s800_s22 = smov [#allocation9]  }
  0x65   : > { %s720_s26 = sshll.u32 %s800_s22, 4  ;;  %s721_s26 = int_to_ptr.vmem [resolvable:$false] %s720_s26 }
  0x66   : > { %v273_v7 = vstv %s272_s16  ;;  %s433_s16 = scalar_lea.sflag [#allocation4], %s976_s25  ;;  %s722_s8 = scalar_lea.vmem %s721_s26, 256 }
  0x67   : > { %v277_v8 = vstv %s276_s11  ;;  %v274_v9 = vmul.f32 %v273_v7, %v270_v5  ;;  %v275_v10 = vmul.f32 %v273_v7, %v271_v6  ;;  %s716_s11 = scalar_lea.vmem %s1002_s14, 128  ;;  %p723_p4 = scmp.lt.s32.totalorder %s1002_s14, %s721_s26 }
  0x68   : > { %p717_p5 = scmp.ne.s32.totalorder %s1002_s14, %s716_s11  ;;  %p724_p12 = scmp.lt.s32.totalorder %s722_s8, %s716_s11 }
  0x69   : > { %v278_v11 = vadd.f32 %v277_v8, %v274_v9  ;;  %v279_v12 = vadd.f32 %v277_v8, %v275_v10 }
  0x6a   : > { %p718_p7 = pnand %p717_p5, %p1068_p0  ;;  %p725_p2 = por %p724_p12, %p723_p4 }
  0x6b   : > { %v579_v13 = vpack.c.bf16 %v279_v12, %v278_v11 }
  0x6c   : > { %p719_p9 = pneg %p718_p7 }
  0x6d   : > { %580 = vmatpush3.bf16.msra.mxu0 %v579_v13 }
  0x6e   : > { %p726_p3 = pnand %p725_p2, %p719_p9 }
  0x70   : > { %569 = vmatmul.mubr.msk.f32.vlgmr.msra.gmra.mrb[0].mxu0 %vm281_vm1, %v280_v14 }
 0x143   : > { %v351_v15 = vpop.f32.mrb[0].mxu0 }
 0x144   : > { %v570_v16 = vpop.f32.mrb[1].mxu0  ;;  %576 = vmatmul.mubr.msk.f32.vlgmr.msra.gmra.mrb[0].mxu1 %vm281_vm1, %v351_v15 }
 0x217   : > { %v426_v17 = vpop.f32.mrb[0].mxu1 }
 0x218   : > { %431 = vst.msk [vmem:[%s269_s17] sm:$0xff] %vm430_vm2, %v426_v17  ;;  %v577_v18 = vpop.f32.mrb[1].mxu1 }
 0x219   : > { %729 = shalt.err (!%p726_p3)
}
 0x21a   : > { %s730_s25 = scalar_lea.hbm %s1000_s12, 128  ;;  %s734_s29 = scalar_lea.hbm %s1048_s5, 512 }
 0x21b   : > { %p731_p11 = scmp.ne.s32.totalorder %s1000_s12, %s730_s25  ;;  %p735_p10 = scmp.lt.u32.totalorder %s1000_s12, %s1048_s5 }
 0x21c   : > { %p736_p1 = scmp.lt.u32.totalorder %s734_s29, %s730_s25  ;;  %p738_p5 = scmp.lt.u32.totalorder %s730_s25, %s1000_s12 }
 0x21d   : > { %p732_p13 = pnand %p731_p11, %p1068_p0 }
 0x21e   : > { %p737_p6 = por %p736_p1, %p735_p10 }
 0x21f   : > { %p733_p8 = pneg %p732_p13 }
 0x220   : > { %p739_p7 = por %p738_p5, %p737_p6 }
 0x222   : > { %p740_p9 = pnand %p739_p7, %p733_p8 }
 0x224   : > { %743 = shalt.err (!%p740_p9)
}
 0x225   : > { %594 = dma.vmem_to_hbm [thread:$0]  (%p1068_p0), %s1002_s14, 128, %s1000_s12, %s433_s16  }
 0x226 PF: > { %p616_p4 = scmp.ge.s32.totalorder %s790_s21, 2  ;;  %s458_s13 = sand.u32 1, %s778_s18  }
 0x227   : > { %p1069_p12 = scmp.ne.s32.totalorder %s1057_s6, 0  ;;  %s459_s17 = scalar_lea.sflag [#allocation4], %s458_s13 }
 0x229   : > { %p608_p2 = pnand %p616_p4, %p1069_p12 }
 0x22b   : > { %773 = dma.done.wait (!%p608_p2), %s459_s17, 128  }
 0x22c   : > { %775 = vsyncadd (!%p608_p2), %s459_s17, 4294967168  ;;  %p20_p3 = scmp.ge.s32.totalorder %s856_s24, 6   ;;  %s1070_s18 = smov %s782_s19 }
 0x22d   : > { %s1071_s19 = smov %s786_s20  ;;  %s1072_s20 = smov %s868_s27 }
 0x22e   : > { %s1073_s21 = smov %s856_s24  ;;  %22 = sbr.rel (!%p20_p3) target bundleno = 7 (0x7), region = 94 }
 0x235   :  { %464 = vsyncpa [#allocation3], 1 }
 0x236   :  { %466 = vsyncpa [#allocation3 + $0x1], 1 }
 0x237   :  { %467 = vsyncpa [#allocation4], 1 }
 0x238   :  { %469 = vsyncpa [#allocation4 + $0x1], 1 }
 0x239   :  { %470 = vsyncpa [#allocation5], 1 }
 0x23a   :  { %472 = vsyncpa [#allocation5 + $0x1], 1 }
 0x23b   :  { %473 = vsyncpa [#allocation7], 1 }

</bundles_post_ra>
